<compile_context>
chip_gen: v5e
topology: v5e:2x2
jax: 0.10.0
libtpu: 0.0.40
codegen_flags: <defaults>
</compile_context>

<pallas_src>
import math
from functools import partial

import jax
import jax.numpy as jnp
from jax.experimental import pallas as pl
from jax.experimental.pallas import tpu as pltpu


def _round_up(x, m):
    return ((x + m - 1) // m) * m


def dqnet_kernel(x_ref, w1_ref, b1_ref, w2_ref, b2_ref, out_ref):
    # Cast activations/weights to bf16 for the MXU fast path; accumulate f32.
    x = x_ref[...].astype(jnp.bfloat16)
    w1 = w1_ref[...].astype(jnp.bfloat16)
    h = jnp.dot(x, w1, preferred_element_type=jnp.float32)
    h = jnp.maximum(h + b1_ref[...], 0.0)            # f32 VPU (safe on v5e)
    w2 = w2_ref[...].astype(jnp.bfloat16)
    q = jnp.dot(h.astype(jnp.bfloat16), w2, preferred_element_type=jnp.float32)
    out_ref[...] = (q + b2_ref[...]).astype(out_ref.dtype)


def _choose_tiling(B, max_tile_b):
    """Return (tile_b, b_pad). Avoid padding whenever possible."""
    if B <= max_tile_b:
        # Prefer 2 tiles when B splits into 8-row-aligned halves, so v7x's
        # two TensorCores both get work on the parallel grid axis.
        half = B // 2
        if B % 2 == 0 and half >= 8 and half % 8 == 0:
            return half, B
        # Single full-batch tile: block dim == full array dim, no padding and
        # no 8-row alignment requirement.
        return B, B
    tile_b = max_tile_b
    return tile_b, _round_up(B, tile_b)


@partial(jax.jit, static_argnames=("max_tile_b",))
def dqnet_forward(x, w1, b1, w2, b2, *, max_tile_b=1024):
    """x: [B, obs] f32, w1: [obs, hid], b1: [hid], w2: [hid, act], b2: [act].

    Returns f32 Q-values of shape [B, act].
    """
    B, obs = x.shape
    hid = w1.shape[1]
    act = w2.shape[1]

    tile_b, b_pad = _choose_tiling(B, max_tile_b)

    # Only pad rows when B is not a multiple of the tile (large-B path).
    x_in = x if b_pad == B else jnp.pad(x, ((0, b_pad - B), (0, 0)))

    # Biases as 2-D rows (tiny; reshape is free).
    b1_2d = b1.reshape(1, hid).astype(jnp.float32)
    b2_2d = b2.reshape(1, act).astype(jnp.float32)

    out = pl.pallas_call(
        dqnet_kernel,
        out_shape=jax.ShapeDtypeStruct((b_pad, act), jnp.float32),
        grid_spec=pl.GridSpec(
            grid=(b_pad // tile_b,),
            in_specs=[
                # activations stream over the batch grid
                pl.BlockSpec((tile_b, obs), lambda i: (i, 0)),
                # weights / biases: same block every iteration -> VMEM-resident
                pl.BlockSpec((obs, hid), lambda i: (0, 0)),
                pl.BlockSpec((1, hid), lambda i: (0, 0)),
                pl.BlockSpec((hid, act), lambda i: (0, 0)),
                pl.BlockSpec((1, act), lambda i: (0, 0)),
            ],
            # Narrow (act-wide) output block: last dim equals the full array
            # dim, so no 128-lane padding and ~32x less HBM writeback.
            out_specs=pl.BlockSpec((tile_b, act), lambda i: (i, 0)),
        ),
        compiler_params=pltpu.CompilerParams(
            # batch tiles are independent -> 2x on v7x megacore, free elsewhere
            dimension_semantics=("parallel",),
        ),
    )(x_in, w1, b1_2d, w2, b2_2d)

    if b_pad != B:
        out = out[:B]
    return out


def init_dqnet_params(key, obs_size, act_size, hid_size=256, dtype=jnp.float32):
    """Deterministic init mirroring nn.Linear's default U(-1/sqrt(fan_in), ...)."""
    k1, k2, k3, k4 = jax.random.split(key, 4)
    bound1 = 1.0 / math.sqrt(obs_size)
    bound2 = 1.0 / math.sqrt(hid_size)
    # Stored as [in, out] (transposed vs. PyTorch's [out, in]) for x @ W.
    w1 = jax.random.uniform(k1, (obs_size, hid_size), dtype, -bound1, bound1)
    b1 = jax.random.uniform(k2, (hid_size,), dtype, -bound1, bound1)
    w2 = jax.random.uniform(k3, (hid_size, act_size), dtype, -bound2, bound2)
    b2 = jax.random.uniform(k4, (act_size,), dtype, -bound2, bound2)
    return w1, b1, w2, b2


if __name__ == "__main__":
    obs_size, act_size, hid_size = 16, 4, 256

    key = jax.random.PRNGKey(0)
    kx, kp = jax.random.split(key)
    w1, b1, w2, b2 = init_dqnet_params(kp, obs_size, act_size, hid_size)

    # batch=8 -> single full-batch tile; batch=16 -> two 8-row tiles (exercises
    # the grid / parallel axis). No padding in either case.
    for batch in (8, 16):
        x = jax.random.normal(jax.random.fold_in(kx, batch),
                              (batch, obs_size), jnp.float32)
        out = jax.block_until_ready(dqnet_forward(x, w1, b1, w2, b2))

        # Reference in plain f32 JAX (same math as the PyTorch forward).
        ref = jnp.maximum(x @ w1 + b1, 0.0) @ w2 + b2
        assert out.shape == (batch, act_size)
        # bf16 MXU inputs with f32 accumulation -> relaxed tolerance vs f32 ref.
        assert jnp.allclose(out, ref, atol=3e-2, rtol=3e-2), (
            float(jnp.max(jnp.abs(out - ref))))

    print("KERNEL_OK")
</pallas_src>

<mosaic_0001>
module attributes {stable_mosaic.version = 11 : i64} {
  func.func @dqnet_kernel(%arg0: i32, %arg1: memref<8x16xf32, #tpu.memory_space<vmem>>, %arg2: memref<16x256xf32, #tpu.memory_space<vmem>>, %arg3: memref<1x256xf32, #tpu.memory_space<vmem>>, %arg4: memref<256x4xf32, #tpu.memory_space<vmem>>, %arg5: memref<1x4xf32, #tpu.memory_space<vmem>>, %arg6: memref<8x4xf32, #tpu.memory_space<vmem>>) attributes {dimension_semantics = [#tpu.dimension_semantics<parallel>], iteration_bounds = array<i64: 1>, scalar_prefetch = 0 : i64, scratch_operands = 0 : i64, tpu.core_type = #tpu.core_type<tc>, window_params = [{transform_indices = @transform_0, window_bounds = array<i64: 8, 16>}, {pipeline_mode = #tpu.pipeline_mode<synchronous>, transform_indices = @transform_1, window_bounds = array<i64: 16, 256>}, {pipeline_mode = #tpu.pipeline_mode<synchronous>, transform_indices = @transform_2, window_bounds = array<i64: 1, 256>}, {pipeline_mode = #tpu.pipeline_mode<synchronous>, transform_indices = @transform_3, window_bounds = array<i64: 256, 4>}, {pipeline_mode = #tpu.pipeline_mode<synchronous>, transform_indices = @transform_4, window_bounds = array<i64: 1, 4>}, {transform_indices = @transform_5, window_bounds = array<i64: 8, 4>}]} {
    %c0 = arith.constant 0 : index
    %c0_0 = arith.constant 0 : index
    %0 = vector.load %arg1[%c0, %c0_0] : memref<8x16xf32, #tpu.memory_space<vmem>>, vector<8x16xf32>
    %1 = arith.truncf %0 : vector<8x16xf32> to vector<8x16xbf16>
    %c0_1 = arith.constant 0 : index
    %c0_2 = arith.constant 0 : index
    %2 = vector.load %arg2[%c0_1, %c0_2] : memref<16x256xf32, #tpu.memory_space<vmem>>, vector<16x256xf32>
    %3 = arith.truncf %2 : vector<16x256xf32> to vector<16x256xbf16>
    %cst = arith.constant dense<0.000000e+00> : vector<8x256xf32>
    %4 = tpu.matmul %1, %3, %cst {dimension_numbers = #tpu.dot_dimension_numbers<[1], [0], [0], [1], [0, 0, 1, 1], [], []>} : vector<8x16xbf16>, vector<16x256xbf16>, vector<8x256xf32> -> vector<8x256xf32>
    %c0_3 = arith.constant 0 : index
    %c0_4 = arith.constant 0 : index
    %5 = vector.load %arg3[%c0_3, %c0_4] : memref<1x256xf32, #tpu.memory_space<vmem>>, vector<1x256xf32>
    %6 = vector.broadcast %5 : vector<1x256xf32> to vector<8x256xf32>
    %7 = arith.addf %4, %6 : vector<8x256xf32>
    %cst_5 = arith.constant 0.000000e+00 : f32
    %8 = vector.broadcast %cst_5 : f32 to vector<8x256xf32>
    %9 = arith.maximumf %7, %8 : vector<8x256xf32>
    %c0_6 = arith.constant 0 : index
    %c0_7 = arith.constant 0 : index
    %10 = vector.load %arg4[%c0_6, %c0_7] : memref<256x4xf32, #tpu.memory_space<vmem>>, vector<256x4xf32>
    %11 = arith.truncf %10 : vector<256x4xf32> to vector<256x4xbf16>
    %12 = arith.truncf %9 : vector<8x256xf32> to vector<8x256xbf16>
    %cst_8 = arith.constant dense<0.000000e+00> : vector<8x4xf32>
    %13 = tpu.matmul %12, %11, %cst_8 {dimension_numbers = #tpu.dot_dimension_numbers<[1], [0], [0], [1], [0, 0, 1, 1], [], []>} : vector<8x256xbf16>, vector<256x4xbf16>, vector<8x4xf32> -> vector<8x4xf32>
    %c0_9 = arith.constant 0 : index
    %c0_10 = arith.constant 0 : index
    %14 = vector.load %arg5[%c0_9, %c0_10] : memref<1x4xf32, #tpu.memory_space<vmem>>, vector<1x4xf32>
    %15 = vector.broadcast %14 : vector<1x4xf32> to vector<8x4xf32>
    %16 = arith.addf %13, %15 : vector<8x4xf32>
    %c0_11 = arith.constant 0 : index
    %c0_12 = arith.constant 0 : index
    %17 = vector.load %arg6[%c0_11, %c0_12] : memref<8x4xf32, #tpu.memory_space<vmem>>, vector<8x4xf32>
    tpu.vector_store %arg6[%c0_11, %c0_12], %16 {strides = array<i32>} : memref<8x4xf32, #tpu.memory_space<vmem>>, vector<8x4xf32>,
    return
  }
  func.func @transform_0(%arg0: i32) -> (i32, i32) {
    %c0_i32 = arith.constant 0 : i32
    %c0_i32_0 = arith.constant 0 : i32
    return %arg0, %c0_i32 : i32, i32
  }
  func.func @transform_1(%arg0: i32) -> (i32, i32) {
    %c0_i32 = arith.constant 0 : i32
    %c0_i32_0 = arith.constant 0 : i32
    %c0_i32_1 = arith.constant 0 : i32
    return %c0_i32, %c0_i32_0 : i32, i32
  }
  func.func @transform_2(%arg0: i32) -> (i32, i32) {
    %c0_i32 = arith.constant 0 : i32
    %c0_i32_0 = arith.constant 0 : i32
    %c0_i32_1 = arith.constant 0 : i32
    return %c0_i32, %c0_i32_0 : i32, i32
  }
  func.func @transform_3(%arg0: i32) -> (i32, i32) {
    %c0_i32 = arith.constant 0 : i32
    %c0_i32_0 = arith.constant 0 : i32
    %c0_i32_1 = arith.constant 0 : i32
    return %c0_i32, %c0_i32_0 : i32, i32
  }
  func.func @transform_4(%arg0: i32) -> (i32, i32) {
    %c0_i32 = arith.constant 0 : i32
    %c0_i32_0 = arith.constant 0 : i32
    %c0_i32_1 = arith.constant 0 : i32
    return %c0_i32, %c0_i32_0 : i32, i32
  }
  func.func @transform_5(%arg0: i32) -> (i32, i32) {
    %c0_i32 = arith.constant 0 : i32
    %c0_i32_0 = arith.constant 0 : i32
    return %arg0, %c0_i32 : i32, i32
  }
}

</mosaic_0001>

<bundles_post_ra>
// kernel: dqnet_forward.1
= control target key start
LH: loop header
LB: loop body
LE: loop exit
PB: predicated region body
PF: predicated region fallthrough
CT: control target
= control target key end

     0   :  { %vm35_vm0 = vcmask 130048   ;;  %vm147_vm1 = vcmask 31744   ;;  %s308_s1 = inlined_call_operand.vmem [shape: f32[16,256], index: 1, kind: input, shape index: {}]   ;;  %s309_s0 = inlined_call_operand.vmem [shape: f32[8,16], index: 0, kind: input, shape index: {}]   ;;  %s310_s3 = inlined_call_operand.vmem [shape: f32[256,4], index: 3, kind: input, shape index: {}]   ;;  %s311_s4 = inlined_call_operand.vmem [shape: f32[1,4], index: 4, kind: input, shape index: {}]   ;;  %s312_s2 = inlined_call_operand.vmem [shape: f32[1,256], index: 2, kind: input, shape index: {}]   ;;  %s313_s5 = inlined_call_operand.vmem [shape: f32[8,4], index: 5, kind: output, shape index: {}]  }
   0x1   :  { %v23_v0 = vld [vmem:[%s308_s1] sm:$0xff]  ;;  %v25_v1 = vld [vmem:[%s308_s1 + $0x10] sm:$0xff]  ;;  %v24_v2 = vld [vmem:[%s308_s1 + $0x8] sm:$0xff] }
   0x2   :  { %v27_v3 = vpack.c.bf16 %v25_v1, %v23_v0  ;;  %v26_v4 = vld [vmem:[%s308_s1 + $0x18] sm:$0xff]  ;;  %v21_v5 = vld [vmem:[%s309_s0] sm:$0xff]  ;;  %v81_v6 = vld [vmem:[%s310_s3 + $0x70] sm:$0xff] }
   0x3   :  { %v28_v7 = vpack.c.bf16 %v26_v4, %v24_v2  ;;  %v22_v8 = vpack.c.bf16 %v21_v5, %v21_v5  ;;  %v82_v9 = vld [vmem:[%s310_s3 + $0x78] sm:$0xff]  ;;  %v97_v10 = vld [vmem:[%s310_s3 + $0xf0] sm:$0xff]  ;;  %v79_v14 = vld [vmem:[%s310_s3 + $0x60] sm:$0xff] }
   0x4   :  { %v98_v11 = vld [vmem:[%s310_s3 + $0xf8] sm:$0xff]  ;;  %46 = vmatpush.bf16.msra.mxu0 %v27_v3  ;;  %v106_v12 = vpack.c.bf16 %v82_v9, %v81_v6  ;;  %v80_v15 = vld [vmem:[%s310_s3 + $0x68] sm:$0xff]  ;;  %v95_v16 = vld [vmem:[%s310_s3 + $0xe0] sm:$0xff] }
   0x5   :  { %v114_v13 = vpack.c.bf16 %v98_v11, %v97_v10  ;;  %59 = vmatpush.bf16.msra.mxu1 %v28_v7  ;;  %v96_v17 = vld [vmem:[%s310_s3 + $0xe8] sm:$0xff]  ;;  %v105_v18 = vpack.c.bf16 %v80_v15, %v79_v14  ;;  %v77_v20 = vld [vmem:[%s310_s3 + $0x50] sm:$0xff]  ;;  %v78_v21 = vld [vmem:[%s310_s3 + $0x58] sm:$0xff] }
   0x6   :  { %121 = vmatpush.bf16.msra.mxu2 %v106_v12  ;;  %v113_v19 = vpack.c.bf16 %v96_v17, %v95_v16  ;;  %v93_v22 = vld [vmem:[%s310_s3 + $0xd0] sm:$0xff]  ;;  %v94_v23 = vld [vmem:[%s310_s3 + $0xd8] sm:$0xff]  ;;  %v104_v24 = vpack.c.bf16 %v78_v21, %v77_v20  ;;  %v75_v26 = vld [vmem:[%s310_s3 + $0x40] sm:$0xff] }
   0x7   :  { %134 = vmatpush.bf16.msra.mxu3 %v114_v13  ;;  %153 = vmatmul.msk.bf16.vlgmr.msra.gmra.mxu0 %vm35_vm0, %v22_v8  ;;  %v112_v25 = vpack.c.bf16 %v94_v23, %v93_v22  ;;  %v76_v27 = vld [vmem:[%s310_s3 + $0x48] sm:$0xff]  ;;  %v91_v28 = vld [vmem:[%s310_s3 + $0xc0] sm:$0xff]  ;;  %v73_v32 = vld [vmem:[%s310_s3 + $0x30] sm:$0xff] }
   0x8   :  { %154 = vmatmul.msk.bf16.vlgmr.msra.gmra.mxu1 %vm35_vm0, %v22_v8  ;;  %v92_v29 = vld [vmem:[%s310_s3 + $0xc8] sm:$0xff]  ;;  %v103_v30 = vpack.c.bf16 %v76_v27, %v75_v26  ;;  %v74_v33 = vld [vmem:[%s310_s3 + $0x38] sm:$0xff]  ;;  %v89_v34 = vld [vmem:[%s310_s3 + $0xb0] sm:$0xff] }
   0x9   :  { %v111_v31 = vpack.c.bf16 %v92_v29, %v91_v28  ;;  %v90_v35 = vld [vmem:[%s310_s3 + $0xb8] sm:$0xff]  ;;  %v102_v36 = vpack.c.bf16 %v74_v33, %v73_v32  ;;  %v71_v38 = vld [vmem:[%s310_s3 + $0x20] sm:$0xff]  ;;  %v72_v39 = vld [vmem:[%s310_s3 + $0x28] sm:$0xff] }
   0xa   :  { %122 = vmatpush.bf16.msra.mxu2 %v105_v18  ;;  %v110_v37 = vpack.c.bf16 %v90_v35, %v89_v34  ;;  %v87_v40 = vld [vmem:[%s310_s3 + $0xa0] sm:$0xff]  ;;  %v88_v41 = vld [vmem:[%s310_s3 + $0xa8] sm:$0xff]  ;;  %v101_v42 = vpack.c.bf16 %v72_v39, %v71_v38  ;;  %v69_v44 = vld [vmem:[%s310_s3 + $0x10] sm:$0xff] }
   0xb   :  { %135 = vmatpush.bf16.msra.mxu3 %v113_v19  ;;  %v109_v43 = vpack.c.bf16 %v88_v41, %v87_v40  ;;  %v70_v45 = vld [vmem:[%s310_s3 + $0x18] sm:$0xff]  ;;  %v85_v46 = vld [vmem:[%s310_s3 + $0x90] sm:$0xff]  ;;  %v67_v50 = vld [vmem:[%s310_s3] sm:$0xff] }
   0xc   :  { %v100_v47 = vpack.c.bf16 %v70_v45, %v69_v44  ;;  %v86_v48 = vld [vmem:[%s310_s3 + $0x98] sm:$0xff]  ;;  %v68_v51 = vld [vmem:[%s310_s3 + $0x8] sm:$0xff]  ;;  %v83_v52 = vld [vmem:[%s310_s3 + $0x80] sm:$0xff] }
   0xd   :  { %v108_v49 = vpack.c.bf16 %v86_v48, %v85_v46  ;;  %v99_v53 = vpack.c.bf16 %v68_v51, %v67_v50  ;;  %v84_v54 = vld [vmem:[%s310_s3 + $0x88] sm:$0xff]  ;;  %v29_v56 = vld [vmem:[%s312_s2] sm:$0x3] }
   0xe   :  { %123 = vmatpush.bf16.msra.mxu2 %v104_v24  ;;  %v107_v55 = vpack.c.bf16 %v84_v54, %v83_v52  ;;  %v31_v57 = vperm.slane %v29_v56, 0  ;;  %v32_v58 = vperm.slane %v29_v56, 1  ;;  %v155_v5 = vld [vmem:[%s311_s4] ss:$0 sm:$0xff] }
   0xf   :  { %136 = vmatpush.bf16.msra.mxu3 %v112_v25 }
  0x12   :  { %124 = vmatpush.bf16.msra.mxu2 %v103_v30 }
  0x13   :  { %137 = vmatpush.bf16.msra.mxu3 %v111_v31 }
  0x16   :  { %125 = vmatpush.bf16.msra.mxu2 %v102_v36 }
  0x17   :  { %138 = vmatpush.bf16.msra.mxu3 %v110_v37 }
  0x1a   :  { %126 = vmatpush.bf16.msra.mxu2 %v101_v42 }
  0x1b   :  { %139 = vmatpush.bf16.msra.mxu3 %v109_v43 }
  0x1e   :  { %127 = vmatpush.bf16.msra.mxu2 %v100_v47 }
  0x1f   :  { %140 = vmatpush.bf16.msra.mxu3 %v108_v49 }
  0x22   :  { %128 = vmatpush.bf16.msra.mxu2 %v99_v53 }
  0x23   :  { %141 = vmatpush.bf16.msra.mxu3 %v107_v55 }
  0x84   :  { %v48_v59 = vpop.f32.mrf.mxu0 }
  0x85   :  { %v49_v60 = vadd.f32 %v48_v59, %v31_v57  ;;  %v61_v61 = vpop.f32.mrf.mxu1 }
  0x86   :  { %v62_v62 = vadd.f32 %v61_v61, %v32_v58 }
  0x87   :  { %v65_v63 = vmax.f32 %v49_v60, 0.0 }
  0x88   :  { %v66_v0 = vmax.f32 %v62_v62, 0.0 }
  0x89   :  { %v115_v1 = vpack.c.bf16 %v65_v63, %v65_v63 }
  0x8a   :  { %v116_v2 = vpack.c.bf16 %v66_v0, %v66_v0 }
  0x8b   :  { %129 = vmatmul.bf16.vlgmr.msra.gmra.mxu2 %v115_v1 }
  0x8c   :  { %142 = vmatmul.bf16.vlgmr.msra.gmra.mxu3 %v116_v2  ;;  %v50_v3 = vpop.f32.mrf.mxu0 }
  0x8d   :  { %v63_v4 = vpop.f32.mrf.mxu1 }
 0x10e   :  { %v130_v6 = vpop.f32.mrf.mxu2 }
 0x10f   :  { %v131_v7 = vadd.f32 %v155_v5, %v130_v6  ;;  %v143_v8 = vpop.f32.mrf.mxu3 }
 0x111   :  { %v144_v9 = vadd.f32 %v143_v8, %v131_v7 }
 0x113   :  { %148 = vst.msk [vmem:[%s313_s5] sm:$0xff] %vm147_vm1, %v144_v9 }
 0x116   :  { %v132_v10 = vpop.f32.mrf.mxu2 }
 0x117   :  { %v145_v11 = vpop.f32.mrf.mxu3 }

</bundles_post_ra>
